<compile_context>
chip_gen: v7x
topology: tpu7x:2x2x1
jax: 0.10.0
libtpu: 0.0.40
codegen_flags: <defaults>
</compile_context>

<pallas_src>
import jax
import jax.numpy as jnp
from jax.experimental import pallas as pl
from jax.experimental.pallas import tpu as pltpu


def _round_up(a, b):
    return (a + b - 1) // b * b


def _cdiv(a, b):
    return -(-a // b)


# ---------------------------------------------------------------------------
# Kernels (fused heads; transposed lane-dense output; in-kernel bf16 cast)
# ---------------------------------------------------------------------------
def _ac_fused_kernel(x_ref, w1_ref, b1_ref, w2_ref, b2_ref, out_ref):
    # x arrives as f32; single cast right before the MXU (hidden under MXU).
    x = x_ref[...].astype(jnp.bfloat16)
    # layer 1: (TM, obs) @ (obs, 2H) -> f32, bias + ReLU
    h = jnp.dot(x, w1_ref[...], preferred_element_type=jnp.float32) + b1_ref[...]
    h = jnp.maximum(h, 0.0).astype(jnp.bfloat16)
    # layer 2: (TM, 2H) @ block-diag(2H, OW) -> f32, bias
    out = jnp.dot(h, w2_ref[...], preferred_element_type=jnp.float32) + b2_ref[...]
    # transpose (TM, OW) -> (OW, TM): TM on the lane axis => unmasked wide stores
    out_ref[...] = out.T


def _ac_fused_kernel_masked(x_ref, mask_ref, w1_ref, b1_ref, w2_ref, b2_ref,
                            out_ref):
    # mask multiply in f32 (v5e has no bf16 VALU), one cast before the MXU
    x = (x_ref[...] * mask_ref[...]).astype(jnp.bfloat16)
    h = jnp.dot(x, w1_ref[...], preferred_element_type=jnp.float32) + b1_ref[...]
    h = jnp.maximum(h, 0.0).astype(jnp.bfloat16)
    out = jnp.dot(h, w2_ref[...], preferred_element_type=jnp.float32) + b2_ref[...]
    out_ref[...] = out.T


# ---------------------------------------------------------------------------
# One-time parameter fusion (hoisted out of the per-call forward pass)
# ---------------------------------------------------------------------------
def prepare_params(params):
    """Fuse actor/critic heads once; returns (fused_weights, action_dim).

    W1 = [wa1 | wc1]            : (obs, 2H)   bf16
    W2 = block-diag(wa2, wc2)   : (2H, OW)    bf16, OW = round_up(A+1, 8)
    biases stay f32; padded output columns are exactly zero.
    """
    obs_dim, hidden = params["wa1"].shape
    action_dim = params["wa2"].shape[1]
    h2 = 2 * hidden
    out_w = action_dim + 1
    ow = _round_up(out_w, 8)

    w1 = jnp.concatenate([params["wa1"], params["wc1"]], axis=1).astype(jnp.bfloat16)
    b1 = jnp.concatenate([params["ba1"], params["bc1"]], axis=1).astype(jnp.float32)

    w2 = jnp.zeros((h2, ow), jnp.float32)
    w2 = w2.at[:hidden, :action_dim].set(params["wa2"])          # actor block
    w2 = w2.at[hidden:, action_dim:out_w].set(params["wc2"])     # critic block
    w2 = w2.astype(jnp.bfloat16)

    b2 = jnp.zeros((1, ow), jnp.float32)
    b2 = b2.at[:, :action_dim].set(params["ba2"])
    b2 = b2.at[:, action_dim:out_w].set(params["bc2"])

    return {"w1": w1, "b1": b1, "w2": w2, "b2": b2}, action_dim


# ---------------------------------------------------------------------------
# Wrapper
# ---------------------------------------------------------------------------
def actor_critic_forward(x, fused, action_dim, attention_mask=None, *,
                         tile_rows=2048):
    """x: (batch, seq, obs_dim) f32.  attention_mask: (batch, seq) or None.

    `fused` is the output of prepare_params().
    Returns (probs, value): (batch, seq, action_dim) and (batch, seq, 1), f32.
    """
    batch, seq, obs_dim = x.shape
    n = batch * seq
    w1, b1, w2, b2 = fused["w1"], fused["b1"], fused["w2"], fused["b2"]
    h2 = w1.shape[1]
    ow = w2.shape[1]

    # Row tile: multiple of 128 (lane axis of the transposed output), capped at
    # tile_rows (fits v5e's 16 MiB scoped VMEM at 2048), and halved when that
    # gives >=2 grid tiles so the "parallel" axis feeds both v7x TensorCores.
    half = _round_up(max(_cdiv(n, 2), 1), 128)
    tm = max(128, min(_round_up(tile_rows, 128), half))
    n_pad = _round_up(n, tm)
    num_tiles = n_pad // tm

    x2d = x.reshape(n, obs_dim)                  # stays f32; cast happens in-kernel
    if n_pad != n:
        x2d = jnp.pad(x2d, ((0, n_pad - n), (0, 0)))

    x_spec = pl.BlockSpec((tm, obs_dim), lambda i: (i, 0))
    out_spec = pl.BlockSpec((ow, tm), lambda i: (0, i))       # lane-dense writeback
    weight_specs = [
        pl.BlockSpec((obs_dim, h2), lambda i: (0, 0)),
        pl.BlockSpec((1, h2), lambda i: (0, 0)),
        pl.BlockSpec((h2, ow), lambda i: (0, 0)),
        pl.BlockSpec((1, ow), lambda i: (0, 0)),
    ]

    weight_bytes = w1.size * 2 + b1.size * 4 + w2.size * 2 + b2.size * 4
    io_bytes = x2d.size * 4 + n_pad * ow * 4

    if attention_mask is None:
        kernel = _ac_fused_kernel
        in_specs = [x_spec] + weight_specs
        args = (x2d, w1, b1, w2, b2)
    else:
        mask2d = attention_mask.reshape(n, 1).astype(jnp.float32)
        if n_pad != n:
            mask2d = jnp.pad(mask2d, ((0, n_pad - n), (0, 0)))
        kernel = _ac_fused_kernel_masked
        in_specs = [x_spec, pl.BlockSpec((tm, 1), lambda i: (i, 0))] + weight_specs
        args = (x2d, mask2d, w1, b1, w2, b2)
        io_bytes += mask2d.size * 4

    cost = pl.CostEstimate(
        flops=2 * n_pad * (obs_dim * h2 + h2 * ow),
        transcendentals=0,
        bytes_accessed=io_bytes + weight_bytes,
    )

    fused_t = pl.pallas_call(
        kernel,
        out_shape=jax.ShapeDtypeStruct((ow, n_pad), jnp.float32),
        grid=(num_tiles,),
        in_specs=in_specs,
        out_specs=out_spec,
        compiler_params=pltpu.CompilerParams(
            dimension_semantics=("parallel",)),
        cost_estimate=cost,
    )(*args)

    # Un-transpose / slice the narrow heads in the wrapper (tiny arrays).
    probs = fused_t[:action_dim, :n].T.reshape(batch, seq, action_dim)
    value = fused_t[action_dim:action_dim + 1, :n].T.reshape(batch, seq, 1)
    return probs, value


# ---------------------------------------------------------------------------
# Parameter init (weights stored (in_features, out_features); biases (1, out))
# ---------------------------------------------------------------------------
def init_params(key, obs_dim, action_dim, hidden=128):
    ks = jax.random.split(key, 8)

    def lin(kw, kb, fan_in, fan_out):
        bound = 1.0 / jnp.sqrt(jnp.float32(fan_in))
        w = jax.random.uniform(kw, (fan_in, fan_out), jnp.float32, -bound, bound)
        b = jax.random.uniform(kb, (1, fan_out), jnp.float32, -bound, bound)
        return w, b

    wa1, ba1 = lin(ks[0], ks[1], obs_dim, hidden)
    wa2, ba2 = lin(ks[2], ks[3], hidden, action_dim)
    wc1, bc1 = lin(ks[4], ks[5], obs_dim, hidden)
    wc2, bc2 = lin(ks[6], ks[7], hidden, 1)
    return dict(wa1=wa1, ba1=ba1, wa2=wa2, ba2=ba2,
                wc1=wc1, bc1=bc1, wc2=wc2, bc2=bc2)


# ---------------------------------------------------------------------------
# References
# ---------------------------------------------------------------------------
def _reference_f32(x, params, attention_mask=None):
    if attention_mask is not None:
        x = x * attention_mask[..., None]
    ha = jnp.maximum(x @ params["wa1"] + params["ba1"], 0.0)
    probs = ha @ params["wa2"] + params["ba2"]
    hc = jnp.maximum(x @ params["wc1"] + params["bc1"], 0.0)
    value = hc @ params["wc2"] + params["bc2"]
    return probs, value


def _reference_bf16(x, params, attention_mask=None):
    # Mirrors the kernel's precision: bf16 operands, f32 accumulation/bias.
    if attention_mask is not None:
        x = x * attention_mask[..., None]
    xb = x.astype(jnp.bfloat16)

    def lin(a, w, b):
        return jnp.dot(a, w.astype(jnp.bfloat16),
                       preferred_element_type=jnp.float32) + b

    ha = jnp.maximum(lin(xb, params["wa1"], params["ba1"]), 0.0).astype(jnp.bfloat16)
    probs = lin(ha, params["wa2"], params["ba2"])
    hc = jnp.maximum(lin(xb, params["wc1"], params["bc1"]), 0.0).astype(jnp.bfloat16)
    value = lin(hc, params["wc2"], params["bc2"])
    return probs, value


# ---------------------------------------------------------------------------
if __name__ == "__main__":
    batch, seq, obs_dim, action_dim = 2, 8, 32, 4

    key = jax.random.PRNGKey(0)
    kx, km, kp = jax.random.split(key, 3)

    x = jax.random.normal(kx, (batch, seq, obs_dim), dtype=jnp.float32)
    attention_mask = (jax.random.uniform(km, (batch, seq)) > 0.2).astype(jnp.float32)
    params = init_params(kp, obs_dim, action_dim)

    # One-time head fusion (reused across every forward call).
    fused, act_dim = prepare_params(params)
    fused = jax.block_until_ready(fused)

    # Masked path
    probs, value = actor_critic_forward(x, fused, act_dim, attention_mask)
    probs, value = jax.block_until_ready((probs, value))
    assert probs.shape == (batch, seq, action_dim)
    assert value.shape == (batch, seq, 1)

    rp_bf, rv_bf = _reference_bf16(x, params, attention_mask)
    rp_f32, rv_f32 = _reference_f32(x, params, attention_mask)
    assert jnp.allclose(probs, rp_bf, atol=2e-3, rtol=2e-3)
    assert jnp.allclose(value, rv_bf, atol=2e-3, rtol=2e-3)
    assert jnp.allclose(probs, rp_f32, atol=5e-2, rtol=5e-2)
    assert jnp.allclose(value, rv_f32, atol=5e-2, rtol=5e-2)

    # Unmasked (specialized) path
    probs_nm, value_nm = actor_critic_forward(x, fused, act_dim, None)
    probs_nm, value_nm = jax.block_until_ready((probs_nm, value_nm))
    rp_nm, rv_nm = _reference_bf16(x, params, None)
    assert jnp.allclose(probs_nm, rp_nm, atol=2e-3, rtol=2e-3)
    assert jnp.allclose(value_nm, rv_nm, atol=2e-3, rtol=2e-3)

    print("KERNEL_OK")
</pallas_src>

<mosaic_0001>
module attributes {stable_mosaic.version = 11 : i64} {
  func.func @_ac_fused_kernel_masked(%arg0: i32, %arg1: memref<128x32xf32, #tpu.memory_space<vmem>>, %arg2: memref<128x1xf32, #tpu.memory_space<vmem>>, %arg3: memref<32x256xbf16, #tpu.memory_space<vmem>>, %arg4: memref<1x256xf32, #tpu.memory_space<vmem>>, %arg5: memref<256x8xbf16, #tpu.memory_space<vmem>>, %arg6: memref<1x8xf32, #tpu.memory_space<vmem>>, %arg7: memref<8x128xf32, #tpu.memory_space<vmem>>) attributes {dimension_semantics = [#tpu.dimension_semantics<parallel>], iteration_bounds = array<i64: 1>, scalar_prefetch = 0 : i64, scratch_operands = 0 : i64, tpu.core_type = #tpu.core_type<tc>, window_params = [{transform_indices = @transform_0, window_bounds = array<i64: 128, 32>}, {transform_indices = @transform_1, window_bounds = array<i64: 128, 1>}, {pipeline_mode = #tpu.pipeline_mode<synchronous>, transform_indices = @transform_2, window_bounds = array<i64: 32, 256>}, {pipeline_mode = #tpu.pipeline_mode<synchronous>, transform_indices = @transform_3, window_bounds = array<i64: 1, 256>}, {pipeline_mode = #tpu.pipeline_mode<synchronous>, transform_indices = @transform_4, window_bounds = array<i64: 256, 8>}, {pipeline_mode = #tpu.pipeline_mode<synchronous>, transform_indices = @transform_5, window_bounds = array<i64: 1, 8>}, {transform_indices = @transform_6, window_bounds = array<i64: 8, 128>}]} {
    %c0 = arith.constant 0 : index
    %c0_0 = arith.constant 0 : index
    %0 = vector.load %arg1[%c0, %c0_0] : memref<128x32xf32, #tpu.memory_space<vmem>>, vector<128x32xf32>
    %c0_1 = arith.constant 0 : index
    %c0_2 = arith.constant 0 : index
    %1 = vector.load %arg2[%c0_1, %c0_2] : memref<128x1xf32, #tpu.memory_space<vmem>>, vector<128x1xf32>
    %2 = vector.broadcast %1 : vector<128x1xf32> to vector<128x32xf32>
    %3 = arith.mulf %0, %2 : vector<128x32xf32>
    %4 = arith.truncf %3 : vector<128x32xf32> to vector<128x32xbf16>
    %c0_3 = arith.constant 0 : index
    %c0_4 = arith.constant 0 : index
    %5 = vector.load %arg3[%c0_3, %c0_4] : memref<32x256xbf16, #tpu.memory_space<vmem>>, vector<32x256xbf16>
    %cst = arith.constant dense<0.000000e+00> : vector<128x256xf32>
    %6 = tpu.matmul %4, %5, %cst {dimension_numbers = #tpu.dot_dimension_numbers<[1], [0], [0], [1], [0, 0, 1, 1], [], []>} : vector<128x32xbf16>, vector<32x256xbf16>, vector<128x256xf32> -> vector<128x256xf32>
    %c0_5 = arith.constant 0 : index
    %c0_6 = arith.constant 0 : index
    %7 = vector.load %arg4[%c0_5, %c0_6] : memref<1x256xf32, #tpu.memory_space<vmem>>, vector<1x256xf32>
    %8 = vector.broadcast %7 : vector<1x256xf32> to vector<128x256xf32>
    %9 = arith.addf %6, %8 : vector<128x256xf32>
    %cst_7 = arith.constant 0.000000e+00 : f32
    %10 = vector.broadcast %cst_7 : f32 to vector<128x256xf32>
    %11 = arith.maximumf %9, %10 : vector<128x256xf32>
    %12 = arith.truncf %11 : vector<128x256xf32> to vector<128x256xbf16>
    %c0_8 = arith.constant 0 : index
    %c0_9 = arith.constant 0 : index
    %13 = vector.load %arg5[%c0_8, %c0_9] : memref<256x8xbf16, #tpu.memory_space<vmem>>, vector<256x8xbf16>
    %cst_10 = arith.constant dense<0.000000e+00> : vector<128x8xf32>
    %14 = tpu.matmul %12, %13, %cst_10 {dimension_numbers = #tpu.dot_dimension_numbers<[1], [0], [0], [1], [0, 0, 1, 1], [], []>} : vector<128x256xbf16>, vector<256x8xbf16>, vector<128x8xf32> -> vector<128x8xf32>
    %c0_11 = arith.constant 0 : index
    %c0_12 = arith.constant 0 : index
    %15 = vector.load %arg6[%c0_11, %c0_12] : memref<1x8xf32, #tpu.memory_space<vmem>>, vector<1x8xf32>
    %16 = vector.broadcast %15 : vector<1x8xf32> to vector<128x8xf32>
    %17 = arith.addf %14, %16 : vector<128x8xf32>
    %18 = tpu.transpose %17, [1, 0] : vector<128x8xf32> -> vector<8x128xf32>
    %c0_13 = arith.constant 0 : index
    %c0_14 = arith.constant 0 : index
    %19 = vector.load %arg7[%c0_13, %c0_14] : memref<8x128xf32, #tpu.memory_space<vmem>>, vector<8x128xf32>
    tpu.vector_store %arg7[%c0_13, %c0_14], %18 {strides = array<i32>} : memref<8x128xf32, #tpu.memory_space<vmem>>, vector<8x128xf32>,
    return
  }
  func.func @transform_0(%arg0: i32) -> (i32, i32) {
    %c0_i32 = arith.constant 0 : i32
    %c0_i32_0 = arith.constant 0 : i32
    return %arg0, %c0_i32 : i32, i32
  }
  func.func @transform_1(%arg0: i32) -> (i32, i32) {
    %c0_i32 = arith.constant 0 : i32
    %c0_i32_0 = arith.constant 0 : i32
    return %arg0, %c0_i32 : i32, i32
  }
  func.func @transform_2(%arg0: i32) -> (i32, i32) {
    %c0_i32 = arith.constant 0 : i32
    %c0_i32_0 = arith.constant 0 : i32
    %c0_i32_1 = arith.constant 0 : i32
    return %c0_i32, %c0_i32_0 : i32, i32
  }
  func.func @transform_3(%arg0: i32) -> (i32, i32) {
    %c0_i32 = arith.constant 0 : i32
    %c0_i32_0 = arith.constant 0 : i32
    %c0_i32_1 = arith.constant 0 : i32
    return %c0_i32, %c0_i32_0 : i32, i32
  }
  func.func @transform_4(%arg0: i32) -> (i32, i32) {
    %c0_i32 = arith.constant 0 : i32
    %c0_i32_0 = arith.constant 0 : i32
    %c0_i32_1 = arith.constant 0 : i32
    return %c0_i32, %c0_i32_0 : i32, i32
  }
  func.func @transform_5(%arg0: i32) -> (i32, i32) {
    %c0_i32 = arith.constant 0 : i32
    %c0_i32_0 = arith.constant 0 : i32
    %c0_i32_1 = arith.constant 0 : i32
    return %c0_i32, %c0_i32_0 : i32, i32
  }
  func.func @transform_6(%arg0: i32) -> (i32, i32) {
    %c0_i32 = arith.constant 0 : i32
    %c0_i32_0 = arith.constant 0 : i32
    return %c0_i32, %arg0 : i32, i32
  }
}

</mosaic_0001>

<bundles_post_ra>
// kernel: tpu_custom_call.1
= control target key start
LH: loop header
LB: loop body
LE: loop exit
PB: predicated region body
PF: predicated region fallthrough
CT: control target
= control target key end

     0   :  { %v821_v2 = vmov 0   ;;  %s1104_s0 = inlined_call_operand.vmem [shape: f32[128,32], index: 0, kind: input, shape index: {}]   ;;  %s1105_s1 = inlined_call_operand.vmem [shape: f32[128,1], index: 1, kind: input, shape index: {}]   ;;  %s1106_s2 = inlined_call_operand.vmem [shape: bf16[32,256], index: 2, kind: input, shape index: {}]   ;;  %s1107_s3 = inlined_call_operand.vmem [shape: f32[1,256], index: 3, kind: input, shape index: {}]   ;;  %s1108_s4 = inlined_call_operand.vmem [shape: bf16[256,8], index: 4, kind: input, shape index: {}]   ;;  %s1109_s5 = inlined_call_operand.vmem [shape: f32[1,8], index: 5, kind: input, shape index: {}]   ;;  %s1110_s6 = inlined_call_operand.hbm [shape: f32[8,128], index: 6, kind: output, shape index: {}]  }
   0x1   :  { %v43_v0 = vld [vmem:[%s1105_s1 + $0x10] sm:$0xff]  ;;  %v41_v1 = vld [vmem:[%s1105_s1] sm:$0xff]  ;;  %774 = vset.pattern.permute.xlu1 %v821_v2  ;;  %773 = vset.pattern.permute.xlu0 %v821_v2  ;;  %v44_v3 = vld [vmem:[%s1105_s1 + $0x18] sm:$0xff] }
   0x2   :  { %69 = vperm.xlu1 %774, %v43_v0   ;;  %59 = vperm.xlu0 %773, %v41_v1   ;;  %v42_v4 = vld [vmem:[%s1105_s1 + $0x8] sm:$0xff]  ;;  %v45_v7 = vld [vmem:[%s1105_s1 + $0x20] sm:$0xff]  ;;  %v778_v9 = vld [vmem:[%s1106_s2 + $0x14] ss:$8 sps:$4 sm:$0xff]  }
   0x3   :  { %254 = vmatprep.mubr.bf16.mxu0 %v821_v2  ;;  %v775_v5 = vld [vmem:[%s1106_s2 + $0x4] ss:$8 sps:$4 sm:$0xff]   ;;  %v777_v8 = vld [vmem:[%s1106_s2] ss:$8 sps:$4 sm:$0xff]   ;;  %v48_v10 = vld [vmem:[%s1105_s1 + $0x38] sm:$0xff] }
   0x4   :  { %v46_v6 = vld [vmem:[%s1105_s1 + $0x28] sm:$0xff]  ;;  %222 = vmatprep.subr.bf16.mxu0 %v775_v5  ;;  %v47_v11 = vld [vmem:[%s1105_s1 + $0x30] sm:$0xff]  ;;  %v49_v14 = vld [vmem:[%s1105_s1 + $0x40] sm:$0xff] }
   0x5   :  { %223 = vmatpush1.bf16.msra.mxu0 %v777_v8  ;;  %v780_v12 = vld [vmem:[%s1106_s2 + $0x10] ss:$8 sps:$4 sm:$0xff]   ;;  %v50_v13 = vld [vmem:[%s1105_s1 + $0x48] sm:$0xff] }
   0x6   :  { %74 = vperm.xlu1 %774, %v44_v3   ;;  %64 = vperm.xlu0 %773, %v42_v4   ;;  %v52_v15 = vld [vmem:[%s1105_s1 + $0x58] sm:$0xff]  ;;  %v51_v16 = vld [vmem:[%s1105_s1 + $0x50] sm:$0xff] }
   0x7   :  { %224 = vmatprep.subr.bf16.mxu0 %v778_v9 }
   0x9   :  { %225 = vmatpush1.bf16.msra.mxu0 %v780_v12 }
   0xa   :  { %84 = vperm.xlu1 %774, %v46_v6   ;;  %79 = vperm.xlu0 %773, %v45_v7  }
   0xe   :  { %94 = vperm.xlu1 %774, %v48_v10   ;;  %89 = vperm.xlu0 %773, %v47_v11  }
  0x12   :  { %104 = vperm.xlu1 %774, %v50_v13   ;;  %99 = vperm.xlu0 %773, %v49_v14  }
  0x16   :  { %114 = vperm.xlu1 %774, %v52_v15   ;;  %109 = vperm.xlu0 %773, %v51_v16  }
  0x17   :  { %11 = vsyncpa [#allocation3], 0  ;;  %v54_v17 = vld [vmem:[%s1105_s1 + $0x68] sm:$0xff]  ;;  %v53_v18 = vld [vmem:[%s1105_s1 + $0x60] sm:$0xff]  ;;  %vm197_vm0 = vcmask 261120  }
  0x18   :  { %v56_v19 = vld [vmem:[%s1105_s1 + $0x78] sm:$0xff]  ;;  %v55_v20 = vld [vmem:[%s1105_s1 + $0x70] sm:$0xff]  ;;  %v781_v21 = vld [vmem:[%s1108_s4 + $0x40] sm:$0xff]  }
  0x19   :  { %v782_v22 = vld [vmem:[%s1108_s4] sm:$0xff]   ;;  %691 = vmatprep.subr.bf16.mxu0 %v781_v21  ;;  %v783_v23 = vld [vmem:[%s1108_s4 + $0x48] sm:$0xff]   ;;  %755 = vmatprep.subr.bf16.mxu1 %v781_v21  ;;  %v785_v25 = vld [vmem:[%s1108_s4 + $0x50] sm:$0xff]  }
  0x1a   :  { %124 = vperm.xlu1 %774, %v54_v17   ;;  %119 = vperm.xlu0 %773, %v53_v18   ;;  %v784_v24 = vld [vmem:[%s1108_s4 + $0x8] sm:$0xff]   ;;  %v786_v26 = vld [vmem:[%s1108_s4 + $0x10] sm:$0xff]   ;;  %v787_v27 = vld [vmem:[%s1108_s4 + $0x58] sm:$0xff]  }
  0x1b   :  { %763 = vmatpush3.bf16.msra.mxu1 %v782_v22  ;;  %v788_v28 = vld [vmem:[%s1108_s4 + $0x18] sm:$0xff]   ;;  %v789_v29 = vld [vmem:[%s1108_s4 + $0x60] sm:$0xff]   ;;  %v791_v31 = vld [vmem:[%s1108_s4 + $0x68] sm:$0xff]  }
  0x1c   :  { %756 = vmatprep.subr.bf16.mxu1 %v783_v23  ;;  %v790_v30 = vld [vmem:[%s1108_s4 + $0x20] sm:$0xff]   ;;  %v792_v32 = vld [vmem:[%s1108_s4 + $0x28] sm:$0xff]   ;;  %v793_v33 = vld [vmem:[%s1108_s4 + $0x70] sm:$0xff]  }
  0x1d   :  { %v794_v34 = vld [vmem:[%s1108_s4 + $0x30] sm:$0xff]   ;;  %v25_v36 = vld [vmem:[%s1104_s0] sm:$0xff]  ;;  %v26_v37 = vld [vmem:[%s1104_s0 + $0x8] sm:$0xff] }
  0x1e   :  { %134 = vperm.xlu1 %774, %v56_v19   ;;  %129 = vperm.xlu0 %773, %v55_v20   ;;  %v27_v43 = vld [vmem:[%s1104_s0 + $0x10] sm:$0xff]  ;;  %v28_v44 = vld [vmem:[%s1104_s0 + $0x18] sm:$0xff]  ;;  %v30_v50 = vld [vmem:[%s1104_s0 + $0x28] sm:$0xff] }
  0x1f   :  { %764 = vmatpush3.bf16.msra.mxu1 %v784_v24  ;;  %v29_v52 = vld [vmem:[%s1104_s0 + $0x20] sm:$0xff]  ;;  %v32_v57 = vld [vmem:[%s1104_s0 + $0x38] sm:$0xff]  ;;  %v31_v59 = vld [vmem:[%s1104_s0 + $0x30] sm:$0xff] }
  0x20   :  { %757 = vmatprep.subr.bf16.mxu1 %v785_v25  ;;  %v34_v0 = vld [vmem:[%s1104_s0 + $0x48] sm:$0xff]  ;;  %v33_v3 = vld [vmem:[%s1104_s0 + $0x40] sm:$0xff]  ;;  %v36_v8 = vld [vmem:[%s1104_s0 + $0x58] sm:$0xff] }
  0x21   :  { %v35_v10 = vld [vmem:[%s1104_s0 + $0x50] sm:$0xff]  ;;  %v38_v15 = vld [vmem:[%s1104_s0 + $0x68] sm:$0xff]  ;;  %v37_v17 = vld [vmem:[%s1104_s0 + $0x60] sm:$0xff] }
  0x23   :  { %765 = vmatpush3.bf16.msra.mxu1 %v786_v26 }
  0x24   :  { %758 = vmatprep.subr.bf16.mxu1 %v787_v27 }
  0x27   :  { %766 = vmatpush3.bf16.msra.mxu1 %v788_v28 }
  0x28   :  { %759 = vmatprep.subr.bf16.mxu1 %v789_v29 }
  0x2b   :  { %767 = vmatpush3.bf16.msra.mxu1 %v790_v30 }
  0x2c   :  { %760 = vmatprep.subr.bf16.mxu1 %v791_v31 }
  0x2f   :  { %768 = vmatpush3.bf16.msra.mxu1 %v792_v32 }
  0x30   :  { %761 = vmatprep.subr.bf16.mxu1 %v793_v33 }
  0x33   :  { %769 = vmatpush3.bf16.msra.mxu1 %v794_v34 }
  0x81   :  { %v60_v35 = vpop.permute.xlu0 %59  ;;  %v70_v38 = vpop.permute.xlu1 %69 }
  0x82   :  { %v137_v40 = vmul.f32 %v60_v35, %v25_v36  ;;  %v139_v46 = vmul.f32 %v70_v38, %v27_v43 }
  0x85   :  { %v65_v39 = vpop.permute.xlu0 %64  ;;  %v75_v45 = vpop.permute.xlu1 %74 }
  0x86   :  { %v138_v41 = vmul.f32 %v65_v39, %v26_v37  ;;  %v140_v47 = vmul.f32 %v75_v45, %v28_v44 }
  0x88   :  { %v153_v42 = vpack.c.bf16 %v138_v41, %v137_v40  ;;  %v154_v48 = vpack.c.bf16 %v140_v47, %v139_v46 }
  0x89   :  { %v85_v49 = vpop.permute.xlu1 %84  ;;  %v80_v51 = vpop.permute.xlu0 %79 }
  0x8a   :  { %666 = vmatmul.mubr.msk.bf16.vlgmr.msra.gmra.mrb[0].mxu0 %vm197_vm0, %v153_v42  ;;  %v142_v53 = vmul.f32 %v85_v49, %v30_v50  ;;  %v141_v54 = vmul.f32 %v80_v51, %v29_v52 }
  0x8b   :  { %264 = vmatprep.mubr.bf16.mxu0 %v821_v2  ;;  %692 = vmatpush3.bf16.msra.mxu0 %v782_v22  ;;  %v40_v22 = vld [vmem:[%s1104_s0 + $0x78] sm:$0xff] }
  0x8c   :  { %693 = vmatprep.subr.bf16.mxu0 %v783_v23  ;;  %v155_v55 = vpack.c.bf16 %v142_v53, %v141_v54 }
  0x8d   :  { %v95_v56 = vpop.permute.xlu1 %94  ;;  %v90_v58 = vpop.permute.xlu0 %89 }
  0x8e   :  { %v144_v60 = vmul.f32 %v95_v56, %v32_v57  ;;  %v143_v61 = vmul.f32 %v90_v58, %v31_v59 }
  0x8f   :  { %694 = vmatpush3.bf16.msra.mxu0 %v784_v24  ;;  %v39_v24 = vld [vmem:[%s1104_s0 + $0x70] sm:$0xff] }
  0x90   :  { %695 = vmatprep.subr.bf16.mxu0 %v785_v25  ;;  %v156_v62 = vpack.c.bf16 %v144_v60, %v143_v61 }
  0x91   :  { %v105_v63 = vpop.permute.xlu1 %104  ;;  %v100_v1 = vpop.permute.xlu0 %99 }
  0x92   :  { %667 = vmatmul.mubr.msk.bf16.gmra.mrb[4].mxu0 %vm197_vm0, %v154_v48  ;;  %v146_v4 = vmul.f32 %v105_v63, %v34_v0  ;;  %v145_v5 = vmul.f32 %v100_v1, %v33_v3 }
  0x93   :  { %274 = vmatprep.mubr.bf16.mxu0 %v821_v2  ;;  %696 = vmatpush3.bf16.msra.mxu0 %v786_v26 }
  0x94   :  { %697 = vmatprep.subr.bf16.mxu0 %v787_v27  ;;  %v157_v6 = vpack.c.bf16 %v146_v4, %v145_v5 }
  0x95   :  { %v115_v7 = vpop.permute.xlu1 %114  ;;  %v110_v9 = vpop.permute.xlu0 %109 }
  0x96   :  { %v148_v11 = vmul.f32 %v115_v7, %v36_v8  ;;  %v147_v12 = vmul.f32 %v110_v9, %v35_v10 }
  0x97   :  { %698 = vmatpush3.bf16.msra.mxu0 %v788_v28  ;;  %v795_v28 = vld [vmem:[%s1108_s4 + $0x78] sm:$0xff]  }
  0x98   :  { %699 = vmatprep.subr.bf16.mxu0 %v789_v29  ;;  %v158_v13 = vpack.c.bf16 %v148_v11, %v147_v12  ;;  %v796_v29 = vld [vmem:[%s1108_s4 + $0x38] sm:$0xff]   ;;  %762 = vmatprep.subr.bf16.mxu1 %v795_v28 }
  0x99   :  { %v125_v14 = vpop.permute.xlu1 %124  ;;  %v120_v16 = vpop.permute.xlu0 %119  ;;  %770 = vmatpush3.bf16.msra.mxu1 %v796_v29 }
  0x9a   :  { %668 = vmatmul.mubr.msk.bf16.gmra.mrb[8].mxu0 %vm197_vm0, %v155_v55  ;;  %v150_v18 = vmul.f32 %v125_v14, %v38_v15  ;;  %v149_v19 = vmul.f32 %v120_v16, %v37_v17 }
  0x9b   :  { %284 = vmatprep.mubr.bf16.mxu0 %v821_v2  ;;  %700 = vmatpush3.bf16.msra.mxu0 %v790_v30  ;;  %v167_v30 = vlaneseq }
  0x9c   :  { %701 = vmatprep.subr.bf16.mxu0 %v791_v31  ;;  %v159_v20 = vpack.c.bf16 %v150_v18, %v149_v19 }
  0x9d   :  { %v135_v21 = vpop.permute.xlu1 %134  ;;  %v130_v23 = vpop.permute.xlu0 %129  ;;  %v168_v31 = vshrl.u32 %v167_v30, 7 }
  0x9e   :  { %v152_v25 = vmul.f32 %v135_v21, %v40_v22  ;;  %v151_v26 = vmul.f32 %v130_v23, %v39_v24 }
  0x9f   :  { %702 = vmatpush3.bf16.msra.mxu0 %v792_v32  ;;  %v165_v32 = vld [vmem:[%s1107_s3] sm:$0x3] }
  0xa0   :  { %703 = vmatprep.subr.bf16.mxu0 %v793_v33  ;;  %v160_v27 = vpack.c.bf16 %v152_v25, %v151_v26  ;;  %v173_v33 = vsub.s32 1, %v168_v31 }
  0xa2   :  { %669 = vmatmul.mubr.msk.bf16.gmra.mrb[12].mxu0 %vm197_vm0, %v156_v62  ;;  %v1037_v35 = vrot.slane %v165_v32, %v173_v33 }
  0xa3   :  { %294 = vmatprep.mubr.bf16.mxu0 %v821_v2  ;;  %704 = vmatpush3.bf16.msra.mxu0 %v794_v34 }
  0xa4   :  { %705 = vmatprep.subr.bf16.mxu0 %v795_v28 }
  0xa7   :  { %706 = vmatpush3.bf16.msra.mxu0 %v796_v29 }
  0xaa   :  { %670 = vmatmul.mubr.msk.bf16.gmra.mrb[16].mxu0 %vm197_vm0, %v157_v6 }
  0xab   :  { %304 = vmatprep.mubr.bf16.mxu0 %v821_v2 }
  0xb2   :  { %671 = vmatmul.mubr.msk.bf16.gmra.mrb[20].mxu0 %vm197_vm0, %v158_v13 }
  0xb3   :  { %314 = vmatprep.mubr.bf16.mxu0 %v821_v2 }
  0xba   :  { %672 = vmatmul.mubr.msk.bf16.gmra.mrb[24].mxu0 %vm197_vm0, %v159_v20 }
  0xbb   :  { %324 = vmatprep.mubr.bf16.mxu0 %v821_v2  ;;  %v169_v2 = vsub.s32 0, %v168_v31 }
  0xbd   :  { %v1035_v34 = vrot.slane %v165_v32, %v169_v2 }
  0xc2   :  { %673 = vmatmul.mubr.msk.bf16.gmra.mrb[28].mxu0 %vm197_vm0, %v160_v27 }
 0x15d   :  { %v256_v36 = vpop.f32.mrb[0].mxu0 }
 0x15e   :  { %v257_v37 = vadd.f32 %v256_v36, %v1035_v34  ;;  %v258_v38 = vpop.f32.mrb[1].mxu0 }
 0x15f   :  { %v259_v39 = vadd.f32 %v258_v38, %v1037_v35  ;;  %v260_v40 = vpop.f32.mrb[2].mxu0 }
 0x160   :  { %v261_v41 = vadd.f32 %v260_v40, %v1035_v34  ;;  %v262_v42 = vpop.f32.mrb[3].mxu0  ;;  %v335_v44 = vmax.f32 %v257_v37, 0.0 }
 0x161   :  { %v263_v43 = vadd.f32 %v262_v42, %v1037_v35  ;;  %v336_v46 = vmax.f32 %v259_v39, 0.0 }
 0x162   :  { %v337_v45 = vmax.f32 %v261_v41, 0.0 }
 0x163   :  { %v338_v47 = vmax.f32 %v263_v43, 0.0 }
 0x164   :  { %v367_v48 = vpack.c.bf16 %v337_v45, %v335_v44 }
 0x165   :  { %v368_v49 = vpack.c.bf16 %v338_v47, %v336_v46  ;;  %v266_v50 = vpop.f32.mrb[4].mxu0 }
 0x166   :  { %v267_v51 = vadd.f32 %v266_v50, %v1035_v34  ;;  %v268_v52 = vpop.f32.mrb[5].mxu0 }
 0x167   :  { %v269_v53 = vadd.f32 %v268_v52, %v1037_v35  ;;  %v270_v54 = vpop.f32.mrb[6].mxu0  ;;  %550 = vmatprep.mubr.bf16.mxu0 %v368_v49 }
 0x168   :  { %v271_v55 = vadd.f32 %v270_v54, %v1035_v34  ;;  %v272_v56 = vpop.f32.mrb[7].mxu0  ;;  %551 = vmatmul.mubr.bf16.vlgmr.msra.gmra.mrb[32].mxu0 %v367_v48  ;;  %v339_v58 = vmax.f32 %v267_v51, 0.0 }
 0x169   :  { %v273_v57 = vadd.f32 %v272_v56, %v1037_v35  ;;  %v340_v60 = vmax.f32 %v269_v53, 0.0 }
 0x16a   :  { %v341_v59 = vmax.f32 %v271_v55, 0.0 }
 0x16b   :  { %v342_v61 = vmax.f32 %v273_v57, 0.0 }
 0x16c   :  { %v369_v62 = vpack.c.bf16 %v341_v59, %v339_v58 }
 0x16d   :  { %v276_v63 = vpop.f32.mrb[8].mxu0  ;;  %v370_v0 = vpack.c.bf16 %v342_v61, %v340_v60 }
 0x16e   :  { %v277_v1 = vadd.f32 %v276_v63, %v1035_v34  ;;  %v278_v3 = vpop.f32.mrb[9].mxu0 }
 0x16f   :  { %v279_v4 = vadd.f32 %v278_v3, %v1037_v35  ;;  %v280_v5 = vpop.f32.mrb[10].mxu0  ;;  %558 = vmatprep.mubr.bf16.mxu1 %v370_v0 }
 0x170   :  { %v281_v6 = vadd.f32 %v280_v5, %v1035_v34  ;;  %v282_v7 = vpop.f32.mrb[11].mxu0  ;;  %559 = vmatmul.mubr.bf16.vlgmr.msra.gmra.mrb[0].mxu1 %v369_v62  ;;  %v343_v9 = vmax.f32 %v277_v1, 0.0 }
 0x171   :  { %v283_v8 = vadd.f32 %v282_v7, %v1037_v35  ;;  %v344_v11 = vmax.f32 %v279_v4, 0.0 }
 0x172   :  { %v345_v10 = vmax.f32 %v281_v6, 0.0 }
 0x173   :  { %v346_v12 = vmax.f32 %v283_v8, 0.0 }
 0x174   :  { %v371_v13 = vpack.c.bf16 %v345_v10, %v343_v9 }
 0x175   :  { %v372_v14 = vpack.c.bf16 %v346_v12, %v344_v11  ;;  %v286_v15 = vpop.f32.mrb[12].mxu0 }
 0x176   :  { %v287_v16 = vadd.f32 %v286_v15, %v1035_v34  ;;  %v288_v17 = vpop.f32.mrb[13].mxu0 }
 0x177   :  { %v289_v18 = vadd.f32 %v288_v17, %v1037_v35  ;;  %v290_v19 = vpop.f32.mrb[14].mxu0  ;;  %566 = vmatprep.mubr.bf16.mxu1 %v372_v14 }
 0x178   :  { %v291_v20 = vadd.f32 %v290_v19, %v1035_v34  ;;  %v292_v21 = vpop.f32.mrb[15].mxu0  ;;  %567 = vmatmul.mubr.bf16.gmra.mrb[4].mxu1 %v371_v13  ;;  %v347_v23 = vmax.f32 %v287_v16, 0.0 }
 0x179   :  { %v293_v22 = vadd.f32 %v292_v21, %v1037_v35  ;;  %v348_v25 = vmax.f32 %v289_v18, 0.0 }
 0x17a   :  { %v349_v24 = vmax.f32 %v291_v20, 0.0 }
 0x17b   :  { %v350_v26 = vmax.f32 %v293_v22, 0.0 }
 0x17c   :  { %v373_v27 = vpack.c.bf16 %v349_v24, %v347_v23  ;;  %v1074_v24 = vld [vmem:[%s1109_s5] ss:$0 sm:$0xff]  ;;  %s822_s5 = smov [#allocation2]  }
 0x17d   :  { %v374_v28 = vpack.c.bf16 %v350_v26, %v348_v25  ;;  %v296_v29 = vpop.f32.mrb[16].mxu0  ;;  %s654_s24 = sshll.u32 %s822_s5, 4  ;;  %s655_s24 = int_to_ptr.vmem [resolvable:$true] %s654_s24 }
 0x17e   :  { %v297_v30 = vadd.f32 %v296_v29, %v1035_v34  ;;  %v298_v31 = vpop.f32.mrb[17].mxu0  ;;  %s797_s25 = scalar_lea.vmem %s655_s24, 128  ;;  %p802_p1 = scmp.lt.s32.totalorder %s655_s24, %s655_s24 }
 0x17f   :  { %v299_v2 = vadd.f32 %v298_v31, %v1037_v35  ;;  %v300_v32 = vpop.f32.mrb[18].mxu0  ;;  %574 = vmatprep.mubr.bf16.mxu1 %v374_v28  ;;  %p798_p0 = scmp.ne.s32.totalorder %s655_s24, %s797_s25  ;;  %p803_p2 = scmp.lt.s32.totalorder %s797_s25, %s797_s25 }
 0x180   :  { %v301_v33 = vadd.f32 %v300_v32, %v1035_v34  ;;  %v302_v36 = vpop.f32.mrb[19].mxu0  ;;  %575 = vmatmul.mubr.bf16.gmra.mrb[8].mxu1 %v373_v27  ;;  %v351_v38 = vmax.f32 %v297_v30, 0.0 }
 0x181   :  { %v303_v37 = vadd.f32 %v302_v36, %v1037_v35  ;;  %v352_v40 = vmax.f32 %v299_v2, 0.0  ;;  %p804_p3 = por %p803_p2, %p802_p1 }
 0x182   :  { %v353_v39 = vmax.f32 %v301_v33, 0.0 }
 0x183   :  { %v354_v41 = vmax.f32 %v303_v37, 0.0  ;;  %p805_p4 = pnand %p804_p3, %p798_p0 }
 0x184   :  { %v375_v42 = vpack.c.bf16 %v353_v39, %v351_v38 }
 0x185   :  { %v376_v43 = vpack.c.bf16 %v354_v41, %v352_v40  ;;  %v306_v44 = vpop.f32.mrb[20].mxu0 }
 0x186   :  { %v307_v45 = vadd.f32 %v306_v44, %v1035_v34  ;;  %v308_v46 = vpop.f32.mrb[21].mxu0 }
 0x187   :  { %v309_v47 = vadd.f32 %v308_v46, %v1037_v35  ;;  %v310_v48 = vpop.f32.mrb[22].mxu0  ;;  %582 = vmatprep.mubr.bf16.mxu1 %v376_v43 }
 0x188   :  { %v311_v49 = vadd.f32 %v310_v48, %v1035_v34  ;;  %v312_v50 = vpop.f32.mrb[23].mxu0  ;;  %583 = vmatmul.mubr.bf16.gmra.mrb[12].mxu1 %v375_v42  ;;  %v355_v52 = vmax.f32 %v307_v45, 0.0 }
 0x189   :  { %v313_v51 = vadd.f32 %v312_v50, %v1037_v35  ;;  %v356_v54 = vmax.f32 %v309_v47, 0.0 }
 0x18a   :  { %v357_v53 = vmax.f32 %v311_v49, 0.0 }
 0x18b   :  { %v358_v55 = vmax.f32 %v313_v51, 0.0 }
 0x18c   :  { %v377_v56 = vpack.c.bf16 %v357_v53, %v355_v52 }
 0x18d   :  { %v378_v57 = vpack.c.bf16 %v358_v55, %v356_v54  ;;  %v316_v58 = vpop.f32.mrb[24].mxu0 }
 0x18e   :  { %v317_v59 = vadd.f32 %v316_v58, %v1035_v34  ;;  %v318_v60 = vpop.f32.mrb[25].mxu0 }
 0x18f   :  { %v319_v61 = vadd.f32 %v318_v60, %v1037_v35  ;;  %v320_v62 = vpop.f32.mrb[26].mxu0  ;;  %590 = vmatprep.mubr.bf16.mxu1 %v378_v57 }
 0x190   :  { %v321_v63 = vadd.f32 %v320_v62, %v1035_v34  ;;  %v322_v0 = vpop.f32.mrb[27].mxu0  ;;  %591 = vmatmul.mubr.bf16.gmra.mrb[16].mxu1 %v377_v56  ;;  %v359_v3 = vmax.f32 %v317_v59, 0.0 }
 0x191   :  { %v323_v1 = vadd.f32 %v322_v0, %v1037_v35  ;;  %v360_v5 = vmax.f32 %v319_v61, 0.0 }
 0x192   :  { %v361_v4 = vmax.f32 %v321_v63, 0.0 }
 0x193   :  { %v362_v6 = vmax.f32 %v323_v1, 0.0 }
 0x194   :  { %v379_v7 = vpack.c.bf16 %v361_v4, %v359_v3 }
 0x195   :  { %v380_v8 = vpack.c.bf16 %v362_v6, %v360_v5  ;;  %v326_v9 = vpop.f32.mrb[28].mxu0 }
 0x196   :  { %v327_v10 = vadd.f32 %v326_v9, %v1035_v34  ;;  %v328_v11 = vpop.f32.mrb[29].mxu0 }
 0x197   :  { %v329_v12 = vadd.f32 %v328_v11, %v1037_v35  ;;  %v330_v13 = vpop.f32.mrb[30].mxu0  ;;  %598 = vmatprep.mubr.bf16.mxu1 %v380_v8 }
 0x198   :  { %v331_v14 = vadd.f32 %v330_v13, %v1035_v34  ;;  %v332_v15 = vpop.f32.mrb[31].mxu0  ;;  %599 = vmatmul.mubr.bf16.gmra.mrb[20].mxu1 %v379_v7  ;;  %v363_v17 = vmax.f32 %v327_v10, 0.0 }
 0x199   :  { %v333_v16 = vadd.f32 %v332_v15, %v1037_v35  ;;  %v364_v19 = vmax.f32 %v329_v12, 0.0 }
 0x19a   :  { %v365_v18 = vmax.f32 %v331_v14, 0.0 }
 0x19b   :  { %v366_v20 = vmax.f32 %v333_v16, 0.0 }
 0x19c   :  { %v381_v21 = vpack.c.bf16 %v365_v18, %v363_v17 }
 0x19d   :  { %v382_v22 = vpack.c.bf16 %v366_v20, %v364_v19 }
 0x19f   :  { %606 = vmatprep.mubr.bf16.mxu1 %v382_v22 }
 0x1a0   :  { %607 = vmatmul.mubr.bf16.gmra.mrb[24].mxu1 %v381_v21 }
 0x23b   :  { %v707_v23 = vpop.f32.mrb[32].mxu0 }
 0x23c   :  { %v708_v25 = vpop.f32.mrb[33].mxu0 }
 0x23d   :  { %v709_v34 = vadd.f32 %v708_v25, %v707_v23  ;;  %v710_v26 = vpop.f32.mrb[34].mxu0 }
 0x23e   :  { %v711_v27 = vpop.f32.mrb[35].mxu0 }
 0x23f   :  { %v553_v35 = vadd.f32 %v709_v34, %v1074_v24  ;;  %v712_v28 = vadd.f32 %v711_v27, %v710_v26 }
 0x241   :  { %615 = vxpose.xlu0.b32.start [1/16] (narrow) %v553_v35, 8  ;;  %v556_v29 = vadd.f32 %v712_v28, %v1074_v24 }
 0x243   :  { %v713_v30 = vpop.f32.mrb[0].mxu1 }
 0x244   :  { %v714_v31 = vpop.f32.mrb[1].mxu1 }
 0x245   :  { %v715_v2 = vadd.f32 %v714_v31, %v713_v30  ;;  %v716_v32 = vpop.f32.mrb[2].mxu1  ;;  %616 = vxpose.xlu0.b32.cont [2/16] (narrow) %v556_v29, 8 }
 0x246   :  { %v717_v33 = vpop.f32.mrb[3].mxu1 }
 0x247   :  { %v561_v36 = vadd.f32 %v715_v2, %v1074_v24  ;;  %v718_v37 = vadd.f32 %v717_v33, %v716_v32 }
 0x249   :  { %617 = vxpose.xlu0.b32.cont [3/16] (narrow) %v561_v36, 8  ;;  %v564_v38 = vadd.f32 %v718_v37, %v1074_v24 }
 0x24b   :  { %v719_v39 = vpop.f32.mrb[4].mxu1 }
 0x24c   :  { %v720_v40 = vpop.f32.mrb[5].mxu1 }
 0x24d   :  { %v721_v41 = vadd.f32 %v720_v40, %v719_v39  ;;  %v722_v42 = vpop.f32.mrb[6].mxu1  ;;  %618 = vxpose.xlu0.b32.cont [4/16] (narrow) %v564_v38, 8 }
 0x24e   :  { %v723_v43 = vpop.f32.mrb[7].mxu1 }
 0x24f   :  { %v569_v44 = vadd.f32 %v721_v41, %v1074_v24  ;;  %v724_v45 = vadd.f32 %v723_v43, %v722_v42 }
 0x251   :  { %619 = vxpose.xlu0.b32.cont [5/16] (narrow) %v569_v44, 8  ;;  %v572_v46 = vadd.f32 %v724_v45, %v1074_v24 }
 0x253   :  { %v725_v47 = vpop.f32.mrb[8].mxu1 }
 0x254   :  { %v726_v48 = vpop.f32.mrb[9].mxu1 }
 0x255   :  { %v727_v49 = vadd.f32 %v726_v48, %v725_v47  ;;  %v728_v50 = vpop.f32.mrb[10].mxu1  ;;  %620 = vxpose.xlu0.b32.cont [6/16] (narrow) %v572_v46, 8 }
 0x256   :  { %v729_v51 = vpop.f32.mrb[11].mxu1 }
 0x257   :  { %v577_v52 = vadd.f32 %v727_v49, %v1074_v24  ;;  %v730_v53 = vadd.f32 %v729_v51, %v728_v50 }
 0x259   :  { %621 = vxpose.xlu0.b32.cont [7/16] (narrow) %v577_v52, 8  ;;  %v580_v54 = vadd.f32 %v730_v53, %v1074_v24 }
 0x25b   :  { %v731_v55 = vpop.f32.mrb[12].mxu1 }
 0x25c   :  { %v732_v56 = vpop.f32.mrb[13].mxu1 }
 0x25d   :  { %v733_v57 = vadd.f32 %v732_v56, %v731_v55  ;;  %v734_v58 = vpop.f32.mrb[14].mxu1  ;;  %622 = vxpose.xlu0.b32.cont [8/16] (narrow) %v580_v54, 8 }
 0x25e   :  { %v735_v59 = vpop.f32.mrb[15].mxu1 }
 0x25f   :  { %v585_v60 = vadd.f32 %v733_v57, %v1074_v24  ;;  %v736_v61 = vadd.f32 %v735_v59, %v734_v58 }
 0x261   :  { %623 = vxpose.xlu0.b32.cont [9/16] (narrow) %v585_v60, 8  ;;  %v588_v62 = vadd.f32 %v736_v61, %v1074_v24 }
 0x263   :  { %v737_v63 = vpop.f32.mrb[16].mxu1 }
 0x264   :  { %v738_v0 = vpop.f32.mrb[17].mxu1 }
 0x265   :  { %v739_v1 = vadd.f32 %v738_v0, %v737_v63  ;;  %v740_v3 = vpop.f32.mrb[18].mxu1  ;;  %624 = vxpose.xlu0.b32.cont [10/16] (narrow) %v588_v62, 8 }
 0x266   :  { %v741_v4 = vpop.f32.mrb[19].mxu1 }
 0x267   :  { %v593_v5 = vadd.f32 %v739_v1, %v1074_v24  ;;  %v742_v6 = vadd.f32 %v741_v4, %v740_v3 }
 0x269   :  { %625 = vxpose.xlu0.b32.cont [11/16] (narrow) %v593_v5, 8  ;;  %v596_v7 = vadd.f32 %v742_v6, %v1074_v24 }
 0x26b   :  { %v743_v8 = vpop.f32.mrb[20].mxu1 }
 0x26c   :  { %v744_v9 = vpop.f32.mrb[21].mxu1 }
 0x26d   :  { %v745_v10 = vadd.f32 %v744_v9, %v743_v8  ;;  %v746_v11 = vpop.f32.mrb[22].mxu1  ;;  %626 = vxpose.xlu0.b32.cont [12/16] (narrow) %v596_v7, 8 }
 0x26e   :  { %v747_v12 = vpop.f32.mrb[23].mxu1 }
 0x26f   :  { %v601_v13 = vadd.f32 %v745_v10, %v1074_v24  ;;  %v748_v14 = vadd.f32 %v747_v12, %v746_v11 }
 0x271   :  { %627 = vxpose.xlu0.b32.cont [13/16] (narrow) %v601_v13, 8  ;;  %v604_v15 = vadd.f32 %v748_v14, %v1074_v24 }
 0x273   :  { %v749_v16 = vpop.f32.mrb[24].mxu1 }
 0x274   :  { %v750_v17 = vpop.f32.mrb[25].mxu1 }
 0x275   :  { %v751_v18 = vadd.f32 %v750_v17, %v749_v16  ;;  %v752_v19 = vpop.f32.mrb[26].mxu1  ;;  %628 = vxpose.xlu0.b32.cont [14/16] (narrow) %v604_v15, 8 }
 0x276   :  { %v753_v20 = vpop.f32.mrb[27].mxu1 }
 0x277   :  { %v609_v21 = vadd.f32 %v751_v18, %v1074_v24  ;;  %v754_v22 = vadd.f32 %v753_v20, %v752_v19 }
 0x279   :  { %629 = vxpose.xlu0.b32.cont [15/16] (narrow) %v609_v21, 8  ;;  %v612_v23 = vadd.f32 %v754_v22, %v1074_v24 }
 0x27d   :  { %630 = vxpose.xlu0.b32.end [16/16] (narrow) %v612_v23, 8 }
 0x2c1   :  { %v631_v25 = vpop.trf.xlu0 }
 0x2c2   :  { %647 = vst [vmem:[#allocation2] sm:$0xff] %v631_v25 }
 0x2c3   :  { %808 = shalt.err (!%p805_p4)
}
 0x2c4   :  { %s809_s2 = scalar_lea.hbm %s1110_s6, 128 }
 0x2c5   :  { %p810_p5 = scmp.ne.s32.totalorder %s1110_s6, %s809_s2  ;;  %p813_p6 = scmp.lt.u32.totalorder %s809_s2, %s1110_s6 }
 0x2c7   :  { %p815_p7 = pnand %p813_p6, %p810_p5 }
 0x2c9   :  { %818 = shalt.err (!%p815_p7)
}
 0x2ca   :  { %657 = dma.vmem_to_hbm [thread:$0]  %s655_s24, 128, %s1110_s6, [#allocation3]  }
 0x2cb   :  { %819 = dma.done.wait [#allocation3], 128  }
 0x2cc   :  { %820 = vsyncadd [#allocation3], 4294967168 }
 0x2cd   :  { %661 = vsyncpa [#allocation3], 1 }

</bundles_post_ra>
